<compile_context>
chip_gen: v7x
topology: tpu7x:2x2x1
jax: 0.10.0
libtpu: 0.0.40
codegen_flags: <defaults>
</compile_context>

<pallas_src>
import functools

import jax
import jax.numpy as jnp
from jax.experimental import pallas as pl
from jax.experimental.pallas import tpu as pltpu


def _round_up(x, m):
    return ((x + m - 1) // m) * m


# ----------------------------------------------------------------------------
# Fused input_proj kernel: conv1x1 + GroupNorm with the projected map resident
# in VMEM (grid = (B, phase, T);  phase 0 = project + stats, phase 1 = normalize)
# ----------------------------------------------------------------------------
def _proj_gn_fused_kernel(x_ref, w_ref, b_ref, gmat_ref, gamma_ref, beta_ref,
                          o_ref, y_scr, stats_scr, aff_scr, *,
                          add_bias, count, eps, pad_rows, compute_dtype):
    ph = pl.program_id(1)
    tt = pl.program_id(2)
    nt = pl.num_programs(2)

    @pl.when(ph == 0)
    def _project_and_accumulate():
        @pl.when(tt == 0)
        def _():
            stats_scr[...] = jnp.zeros_like(stats_scr)

        x = x_ref[0].astype(compute_dtype)                        # f32 -> bf16 in-kernel
        y = jnp.dot(x, w_ref[...], preferred_element_type=jnp.float32)
        if add_bias:      # group_size == 1 => bias exactly cancelled by mean subtraction
            y = y + b_ref[...]
        y_scr[tt] = y.astype(compute_dtype)                       # keep y resident in VMEM

        if pad_rows > 0 and add_bias:
            # mask the zero-padded HW rows out of the statistics on the last tile
            row = jax.lax.broadcasted_iota(jnp.int32, y.shape, 0)
            valid = jnp.where(tt == nt - 1, y.shape[0] - pad_rows, y.shape[0])
            y = jnp.where(row < valid, y, 0.0)

        stats_scr[0:1, :] += jnp.sum(y, axis=0, keepdims=True)
        stats_scr[1:2, :] += jnp.sum(y * y, axis=0, keepdims=True)

    @pl.when(ph == 1)
    def _normalize():
        @pl.when(tt == 0)
        def _():
            # channel stats -> group stats (block-diagonal ones matmul keeps channels
            # on lanes); computed ONCE per batch item, not per tile.
            gs = jnp.dot(stats_scr[...], gmat_ref[...],
                         preferred_element_type=jnp.float32)      # (2, D_pad)
            inv_count = 1.0 / count
            mean = gs[0:1, :] * inv_count
            ex2 = gs[1:2, :] * inv_count
            var = jnp.maximum(ex2 - mean * mean, 0.0)
            inv_std = jax.lax.rsqrt(var + eps)
            scale = inv_std * gamma_ref[...]
            aff_scr[0:1, :] = scale
            aff_scr[1:2, :] = beta_ref[...] - mean * scale

        y = y_scr[tt].astype(jnp.float32)
        o_ref[0] = (y * aff_scr[0:1, :] + aff_scr[1:2, :]).astype(o_ref.dtype)


# ----------------------------------------------------------------------------
# Two-pass fallback kernels (feature map too large to keep resident in VMEM)
# ----------------------------------------------------------------------------
def _proj_stats_kernel(x_ref, w_ref, b_ref, y_ref, stats_ref, *,
                       add_bias, pad_rows, compute_dtype):
    tt = pl.program_id(1)
    nt = pl.num_programs(1)

    x = x_ref[0].astype(compute_dtype)
    y = jnp.dot(x, w_ref[...], preferred_element_type=jnp.float32)
    if add_bias:
        y = y + b_ref[...]
    y_ref[0] = y.astype(y_ref.dtype)                              # bf16 intermediate

    @pl.when(tt == 0)
    def _():
        stats_ref[...] = jnp.zeros_like(stats_ref)

    if pad_rows > 0 and add_bias:
        row = jax.lax.broadcasted_iota(jnp.int32, y.shape, 0)
        valid = jnp.where(tt == nt - 1, y.shape[0] - pad_rows, y.shape[0])
        y = jnp.where(row < valid, y, 0.0)

    stats_ref[0, 0:1, :] += jnp.sum(y, axis=0, keepdims=True)
    stats_ref[0, 1:2, :] += jnp.sum(y * y, axis=0, keepdims=True)


def _scale_shift_kernel(y_ref, aff_ref, o_ref):
    y = y_ref[0].astype(jnp.float32)
    o_ref[0] = (y * aff_ref[0, 0:1, :] + aff_ref[0, 1:2, :]).astype(o_ref.dtype)


def input_proj(x_nhwc, w, b, gamma, beta, *, num_groups=32, eps=1e-5,
               hw_tile=512, compute_dtype=jnp.bfloat16, force_two_pass=False):
    """x_nhwc: [B, H, W, Cin] -> [B, H, W, D] (conv1x1 + GroupNorm(num_groups, D))."""
    B, H, W_, Cin = x_nhwc.shape
    D = w.shape[1]
    assert D % num_groups == 0
    gsz = D // num_groups
    HW = H * W_
    D_pad = _round_up(D, 128)

    # HW tiled & zero-padded to the tile size (stats use the true HW count).
    t_hw = min(hw_tile, _round_up(HW, 16))
    HW_pad = _round_up(HW, t_hw)
    T = HW_pad // t_hw
    pad_rows = HW_pad - HW

    cd = compute_dtype
    x_flat = x_nhwc.reshape(B, HW, Cin).astype(jnp.float32)       # cast to bf16 in-kernel
    if pad_rows:
        x_flat = jnp.pad(x_flat, ((0, 0), (0, pad_rows), (0, 0)))
    w_p = jnp.zeros((Cin, D_pad), cd).at[:, :D].set(w.astype(cd))
    b_p = jnp.zeros((1, D_pad), jnp.float32).at[:, :D].set(b.reshape(1, D))
    gamma_p = jnp.zeros((1, D_pad), jnp.float32).at[:, :D].set(gamma.reshape(1, D))
    beta_p = jnp.zeros((1, D_pad), jnp.float32).at[:, :D].set(beta.reshape(1, D))

    add_bias = gsz > 1           # gsz==1: conv bias is exactly removed by the mean
    count = float(HW * gsz)
    vmem = 32 * 1024 * 1024

    # VMEM budget for the fused path (y scratch + double-buffered x/out + weights),
    # sized conservatively so it also fits v7x's 64 MiB physical VMEM.
    fused_bytes = (HW_pad * D_pad * 2            # resident y scratch (bf16)
                   + 2 * t_hw * Cin * 4          # x double buffers (f32)
                   + 2 * t_hw * D_pad * 4        # out double buffers (f32)
                   + 2 * Cin * D_pad * 2         # projection weight (bf16)
                   + D_pad * D_pad * 4           # group broadcast matrix
                   + 8 * D_pad * 4)
    use_fused = (not force_two_pass) and fused_bytes <= 24 * 1024 * 1024

    if use_fused:
        gidx = jnp.arange(D) // gsz
        gmat = jnp.zeros((D_pad, D_pad), jnp.float32).at[:D, :D].set(
            (gidx[:, None] == gidx[None, :]).astype(jnp.float32))

        out = pl.pallas_call(
            functools.partial(_proj_gn_fused_kernel, add_bias=add_bias,
                              count=count, eps=eps, pad_rows=pad_rows,
                              compute_dtype=cd),
            out_shape=jax.ShapeDtypeStruct((B, HW_pad, D_pad), jnp.float32),
            grid=(B, 2, T),
            in_specs=[
                # phase 1 keeps the same x block index as the last phase-0 step,
                # so x is DMA'd exactly T times per batch item.
                pl.BlockSpec((1, t_hw, Cin),
                             lambda bb, ph, tt: (bb, tt * (1 - ph) + (T - 1) * ph, 0)),
                pl.BlockSpec((Cin, D_pad), lambda bb, ph, tt: (0, 0)),
                pl.BlockSpec((1, D_pad), lambda bb, ph, tt: (0, 0)),
                pl.BlockSpec((D_pad, D_pad), lambda bb, ph, tt: (0, 0)),
                pl.BlockSpec((1, D_pad), lambda bb, ph, tt: (0, 0)),
                pl.BlockSpec((1, D_pad), lambda bb, ph, tt: (0, 0)),
            ],
            # phase 0 parks the output index on block 0 (never written there), so
            # nothing is flushed until phase 1 has produced the real data.
            out_specs=pl.BlockSpec((1, t_hw, D_pad),
                                   lambda bb, ph, tt: (bb, tt * ph, 0)),
            scratch_shapes=[
                pltpu.VMEM((T, t_hw, D_pad), cd),          # resident projected map
                pltpu.VMEM((2, D_pad), jnp.float32),       # sum / sumsq
                pltpu.VMEM((2, D_pad), jnp.float32),       # scale / shift
            ],
            compiler_params=pltpu.CompilerParams(
                dimension_semantics=("parallel", "arbitrary", "arbitrary"),
                vmem_limit_bytes=vmem),
        )(x_flat, w_p, b_p, gmat, gamma_p, beta_p)

    else:
        # ---- pass 1: projection (bf16 intermediate) + stats accumulation ----
        y_proj, stats = pl.pallas_call(
            functools.partial(_proj_stats_kernel, add_bias=add_bias,
                              pad_rows=pad_rows, compute_dtype=cd),
            out_shape=(
                jax.ShapeDtypeStruct((B, HW_pad, D_pad), cd),
                jax.ShapeDtypeStruct((B, 2, D_pad), jnp.float32),
            ),
            grid=(B, T),
            in_specs=[
                pl.BlockSpec((1, t_hw, Cin), lambda bb, tt: (bb, tt, 0)),
                pl.BlockSpec((Cin, D_pad), lambda bb, tt: (0, 0)),
                pl.BlockSpec((1, D_pad), lambda bb, tt: (0, 0)),
            ],
            out_specs=(
                pl.BlockSpec((1, t_hw, D_pad), lambda bb, tt: (bb, tt, 0)),
                pl.BlockSpec((1, 2, D_pad), lambda bb, tt: (bb, 0, 0)),
            ),
            compiler_params=pltpu.CompilerParams(
                dimension_semantics=("parallel", "arbitrary"),
                vmem_limit_bytes=vmem),
        )(x_flat, w_p, b_p)

        # Hoisted stats -> (scale, shift): tiny (B, 2, D) math done once in plain JAX.
        s = stats[:, 0, :D]
        ss = stats[:, 1, :D]
        mean_g = s.reshape(B, num_groups, gsz).sum(-1) / count
        ex2_g = ss.reshape(B, num_groups, gsz).sum(-1) / count
        var_g = jnp.maximum(ex2_g - mean_g * mean_g, 0.0)
        inv_g = jax.lax.rsqrt(var_g + eps)
        mean_c = jnp.repeat(mean_g, gsz, axis=1)
        inv_c = jnp.repeat(inv_g, gsz, axis=1)
        scale = inv_c * gamma.reshape(1, D).astype(jnp.float32)
        shift = beta.reshape(1, D).astype(jnp.float32) - mean_c * scale
        aff = jnp.zeros((B, 2, D_pad), jnp.float32)
        aff = aff.at[:, 0, :D].set(scale).at[:, 1, :D].set(shift)

        # ---- pass 2: pure scale + shift (mem-bound, no matmul / rsqrt in the loop) ----
        out = pl.pallas_call(
            _scale_shift_kernel,
            out_shape=jax.ShapeDtypeStruct((B, HW_pad, D_pad), jnp.float32),
            grid=(B, T),
            in_specs=[
                pl.BlockSpec((1, t_hw, D_pad), lambda bb, tt: (bb, tt, 0)),
                pl.BlockSpec((1, 2, D_pad), lambda bb, tt: (bb, 0, 0)),
            ],
            out_specs=pl.BlockSpec((1, t_hw, D_pad), lambda bb, tt: (bb, tt, 0)),
            compiler_params=pltpu.CompilerParams(
                dimension_semantics=("parallel", "parallel"),
                vmem_limit_bytes=vmem),
        )(y_proj, aff)

    if pad_rows or D_pad != D:
        out = out[:, :HW, :D]
    return out.reshape(B, H, W_, D)


# ----------------------------------------------------------------------------
# Kernel 2: flattened prediction heads (fused class | bbox-MLP-1 GEMM)
# ----------------------------------------------------------------------------
def _heads_kernel(x_ref, inv_ref, wf_ref, bf_ref, w2_ref, b2_ref, w3_ref, b3_ref,
                  logits_ref, boxes_ref, *, c1_pad, rdim, compute_dtype):
    x = x_ref[...].astype(compute_dtype)                          # f32 -> bf16 in-kernel
    # fused class projection + bbox MLP layer 1 (lane-aligned split at c1_pad)
    y = jnp.dot(x, wf_ref[...], preferred_element_type=jnp.float32) + bf_ref[...]
    logits_ref[...] = y[:, :c1_pad].astype(logits_ref.dtype)

    h = jnp.maximum(y[:, c1_pad:], 0.0)
    h = jnp.dot(h.astype(compute_dtype), w2_ref[...],
                preferred_element_type=jnp.float32) + b2_ref[...]
    h = jnp.maximum(h, 0.0)
    tmp = jnp.dot(h.astype(compute_dtype), w3_ref[...],
                  preferred_element_type=jnp.float32) + b3_ref[...]  # (tm, box_pad)

    # Add inverse_sigmoid(reference): the narrow (tm, 8) f32 slab is widened to the
    # lane-dense tmp with a small iota/where loop (rdim is 2 or 4, static).
    inv = inv_ref[...]
    col = jax.lax.broadcasted_iota(jnp.int32, tmp.shape, 1)
    for i in range(rdim):
        tmp = tmp + jnp.where(col == i, inv[:, i:i + 1], 0.0)

    boxes_ref[...] = jax.nn.sigmoid(tmp).astype(boxes_ref.dtype)


def mdef_detr_heads(hs, references, params, *, compute_dtype=jnp.bfloat16,
                    box_pad=128, tm_cap=256):
    """hs: [L, B, Q, D]; references: [L, B, Q, 2 or 4] (in (0,1), pre-inverse-sigmoid).

    Returns (outputs_class [L,B,Q,C+1], outputs_coord [L,B,Q,4]).
    pred_logits = outputs_class[-1], pred_boxes = outputs_coord[-1].
    """
    L, B, Q, D = hs.shape
    C1 = params["wc"].shape[1]
    M = L * B * Q
    D_pad = _round_up(D, 128)
    C1_pad = _round_up(C1, 128)
    RP = 8                                    # padded width of the reference slab

    # Row tiling: cap 256, even tile count so the "parallel" axis splits evenly
    # across v7x's two TensorCores; tm is a multiple of 32 (bf16 sublane packing).
    n_tiles = max(2, -(-M // tm_cap))
    if n_tiles % 2:
        n_tiles += 1
    tm = _round_up(-(-M // n_tiles), 32)
    M_pad = tm * n_tiles

    x2d = hs.reshape(M, D).astype(jnp.float32)        # bf16 cast happens in-kernel
    if (M_pad, D_pad) != (M, D):
        x2d = jnp.pad(x2d, ((0, M_pad - M), (0, D_pad - D)))

    # inverse_sigmoid(reference) (torch eps=1e-5 clamp semantics), kept narrow (8 cols).
    eps = 1e-5
    rdim = references.shape[-1]
    r = jnp.clip(references.astype(jnp.float32), 0.0, 1.0)
    inv = jnp.log(jnp.maximum(r, eps) / jnp.maximum(1.0 - r, eps)).reshape(M, rdim)
    inv_p = jnp.zeros((M_pad, RP), jnp.float32).at[:M, :rdim].set(inv)

    cd = compute_dtype
    # Fused (class | bbox layer-1) weight slab; split point lane-aligned at C1_pad.
    Wf = C1_pad + D_pad
    wf = jnp.zeros((D_pad, Wf), cd)
    wf = wf.at[:D, :C1].set(params["wc"].astype(cd))
    wf = wf.at[:D, C1_pad:C1_pad + D].set(params["w1"].astype(cd))
    bf = jnp.zeros((1, Wf), jnp.float32)
    bf = bf.at[:, :C1].set(params["bc"].reshape(1, C1))
    bf = bf.at[:, C1_pad:C1_pad + D].set(params["b1"].reshape(1, D))

    w2 = jnp.zeros((D_pad, D_pad), cd).at[:D, :D].set(params["w2"].astype(cd))
    b2 = jnp.zeros((1, D_pad), jnp.float32).at[:, :D].set(params["b2"].reshape(1, D))
    w3 = jnp.zeros((D_pad, box_pad), cd).at[:D, :4].set(params["w3"].astype(cd))
    b3 = jnp.zeros((1, box_pad), jnp.float32).at[:, :4].set(params["b3"].reshape(1, 4))

    flops = 2 * M_pad * D_pad * (Wf + D_pad + box_pad)
    bytes_accessed = (M_pad * D_pad * 4 + M_pad * RP * 4
                      + D_pad * Wf * 2 + Wf * 4
                      + D_pad * D_pad * 2 + D_pad * 4
                      + D_pad * box_pad * 2 + box_pad * 4
                      + M_pad * C1_pad * 4 + M_pad * box_pad * 4)

    logits_p, boxes_p = pl.pallas_call(
        functools.partial(_heads_kernel, c1_pad=C1_pad, rdim=rdim, compute_dtype=cd),
        out_shape=(
            jax.ShapeDtypeStruct((M_pad, C1_pad), jnp.float32),
            jax.ShapeDtypeStruct((M_pad, box_pad), jnp.float32),
        ),
        grid=(n_tiles,),
        in_specs=[
            pl.BlockSpec((tm, D_pad), lambda i: (i, 0)),
            pl.BlockSpec((tm, RP), lambda i: (i, 0)),
            pl.BlockSpec((D_pad, Wf), lambda i: (0, 0)),
            pl.BlockSpec((1, Wf), lambda i: (0, 0)),
            pl.BlockSpec((D_pad, D_pad), lambda i: (0, 0)),
            pl.BlockSpec((1, D_pad), lambda i: (0, 0)),
            pl.BlockSpec((D_pad, box_pad), lambda i: (0, 0)),
            pl.BlockSpec((1, box_pad), lambda i: (0, 0)),
        ],
        out_specs=(
            pl.BlockSpec((tm, C1_pad), lambda i: (i, 0)),
            pl.BlockSpec((tm, box_pad), lambda i: (i, 0)),
        ),
        compiler_params=pltpu.CompilerParams(
            dimension_semantics=("parallel",),
            vmem_limit_bytes=32 * 1024 * 1024),
        cost_estimate=pl.CostEstimate(flops=flops,
                                      transcendentals=M_pad * box_pad,
                                      bytes_accessed=bytes_accessed),
    )(x2d, inv_p, wf, bf, w2, b2, w3, b3)

    outputs_class = logits_p[:M, :C1].reshape(L, B, Q, C1)
    outputs_coord = boxes_p[:M, :4].reshape(L, B, Q, 4)
    return outputs_class, outputs_coord


# ----------------------------------------------------------------------------
# Deterministic parameter init (shapes from MDefDETR.__init__)
# ----------------------------------------------------------------------------
def init_params(key, hidden_dim, num_classes, c_in):
    ks = jax.random.split(key, 8)
    scale = 0.02
    p = {}
    # class_embed: Linear(hidden_dim, num_classes + 1)  (stored as (in, out) == W.T)
    p["wc"] = scale * jax.random.normal(ks[0], (hidden_dim, num_classes + 1), jnp.float32)
    p["bc"] = jnp.zeros((1, num_classes + 1), jnp.float32)
    # bbox_embed: MLP(hidden_dim, hidden_dim, 4, 3)
    p["w1"] = scale * jax.random.normal(ks[1], (hidden_dim, hidden_dim), jnp.float32)
    p["b1"] = jnp.zeros((1, hidden_dim), jnp.float32)
    p["w2"] = scale * jax.random.normal(ks[2], (hidden_dim, hidden_dim), jnp.float32)
    p["b2"] = jnp.zeros((1, hidden_dim), jnp.float32)
    p["w3"] = scale * jax.random.normal(ks[3], (hidden_dim, 4), jnp.float32)
    # nn.init.constant_(bbox_embed.layers[-1].bias.data[2:], -2.0)
    p["b3"] = jnp.array([[0.0, 0.0, -2.0, -2.0]], jnp.float32)
    # input_proj[0]: Conv2d(c_in, hidden_dim, 1) + GroupNorm(32, hidden_dim)
    p["conv_w"] = scale * jax.random.normal(ks[4], (c_in, hidden_dim), jnp.float32)
    p["conv_b"] = 0.1 * jax.random.normal(ks[5], (hidden_dim,), jnp.float32)
    p["gn_gamma"] = 1.0 + 0.1 * jax.random.normal(ks[6], (hidden_dim,), jnp.float32)
    p["gn_beta"] = 0.1 * jax.random.normal(ks[7], (hidden_dim,), jnp.float32)
    return p


# ----------------------------------------------------------------------------
# Pure-JAX references (f32) for a loose numerical sanity check
# ----------------------------------------------------------------------------
def _ref_input_proj(x_nhwc, w, b, gamma, beta, groups, eps=1e-5):
    Bx, Hx, Wx, _ = x_nhwc.shape
    Dh = w.shape[1]
    y = jnp.einsum("bhwc,cd->bhwd", x_nhwc, w) + b
    gsz = Dh // groups
    yg = y.reshape(Bx, Hx * Wx, groups, gsz)
    mean = yg.mean(axis=(1, 3), keepdims=True)
    var = ((yg - mean) ** 2).mean(axis=(1, 3), keepdims=True)
    yn = ((yg - mean) / jnp.sqrt(var + eps)).reshape(Bx, Hx, Wx, Dh)
    return yn * gamma + beta


def _ref_heads(hs, references, p, eps=1e-5):
    logits = hs @ p["wc"] + p["bc"][0]
    h = jax.nn.relu(hs @ p["w1"] + p["b1"][0])
    h = jax.nn.relu(h @ p["w2"] + p["b2"][0])
    tmp = h @ p["w3"] + p["b3"][0]
    r = jnp.clip(references, 0.0, 1.0)
    inv = jnp.log(jnp.maximum(r, eps) / jnp.maximum(1.0 - r, eps))
    tmp = tmp.at[..., :references.shape[-1]].add(inv)
    return logits, jax.nn.sigmoid(tmp)


if __name__ == "__main__":
    key = jax.random.PRNGKey(0)
    k_param, k_img, k_hs, k_ref0, k_refi = jax.random.split(key, 5)

    # small shapes consistent with the module
    B = 2           # batch
    C_IN = 4        # backbone feature channels
    H = W = 16      # feature-map spatial size
    D = 32          # transformer.d_model (hidden_dim); GroupNorm(32, 32) -> group size 1
    L = 3           # decoder layers
    Q = 8           # num_queries
    NUM_CLASSES = 4

    params = init_params(k_param, D, NUM_CLASSES, C_IN)

    # ---- encode path: input_proj on a synthetic backbone feature map ----
    feat_nchw = jax.random.normal(k_img, (B, C_IN, H, W), jnp.float32)
    feat_nhwc = jnp.transpose(feat_nchw, (0, 2, 3, 1))  # layout: NCHW -> NHWC for the kernel
    src = input_proj(feat_nhwc, params["conv_w"], params["conv_b"],
                     params["gn_gamma"], params["gn_beta"], num_groups=32)
    # also exercise the two-pass (large feature-map) fallback path
    src_2p = input_proj(feat_nhwc, params["conv_w"], params["conv_b"],
                        params["gn_gamma"], params["gn_beta"], num_groups=32,
                        force_two_pass=True)

    # ---- decode path: prediction heads on synthetic decoder outputs ----
    hs = jax.random.normal(k_hs, (L, B, Q, D), jnp.float32)
    init_reference = jax.nn.sigmoid(jax.random.normal(k_ref0, (B, Q, 2), jnp.float32))
    inter_references = jax.nn.sigmoid(jax.random.normal(k_refi, (L - 1, B, Q, 2), jnp.float32))
    references = jnp.concatenate([init_reference[None], inter_references], axis=0)  # [L,B,Q,2]

    outputs_class, outputs_coord = mdef_detr_heads(hs, references, params)
    pred_logits = outputs_class[-1]   # [B, Q, num_classes + 1]
    pred_boxes = outputs_coord[-1]    # [B, Q, 4]

    jax.block_until_ready((src, src_2p, pred_logits, pred_boxes))

    # sanity checks on shapes
    assert src.shape == (B, H, W, D)
    assert src_2p.shape == (B, H, W, D)
    assert pred_logits.shape == (B, Q, NUM_CLASSES + 1)
    assert pred_boxes.shape == (B, Q, 4)

    # loose numerical checks vs. pure-JAX f32 references (bf16 MXU operands -> loose tol)
    src_ref = _ref_input_proj(feat_nhwc, params["conv_w"], params["conv_b"],
                              params["gn_gamma"], params["gn_beta"], 32)
    logits_ref, boxes_ref = _ref_heads(hs, references, params)
    assert bool(jnp.allclose(src, src_ref, atol=1e-1, rtol=1e-1))
    assert bool(jnp.allclose(src_2p, src_ref, atol=1e-1, rtol=1e-1))
    assert bool(jnp.allclose(outputs_class, logits_ref, atol=1e-1, rtol=1e-1))
    assert bool(jnp.allclose(outputs_coord, boxes_ref, atol=1e-1, rtol=1e-1))

    print("KERNEL_OK")
</pallas_src>

<mosaic_0001>
module attributes {stable_mosaic.version = 11 : i64} {
  func.func @_proj_gn_fused_kernel(%arg0: i32, %arg1: i32, %arg2: i32, %arg3: memref<1x256x4xf32, #tpu.memory_space<vmem>>, %arg4: memref<4x128xbf16, #tpu.memory_space<vmem>>, %arg5: memref<1x128xf32, #tpu.memory_space<vmem>>, %arg6: memref<128x128xf32, #tpu.memory_space<vmem>>, %arg7: memref<1x128xf32, #tpu.memory_space<vmem>>, %arg8: memref<1x128xf32, #tpu.memory_space<vmem>>, %arg9: memref<1x256x128xf32, #tpu.memory_space<vmem>>, %arg10: memref<1x256x128xbf16, #tpu.memory_space<vmem>>, %arg11: memref<2x128xf32, #tpu.memory_space<vmem>>, %arg12: memref<2x128xf32, #tpu.memory_space<vmem>>) attributes {dimension_semantics = [#tpu.dimension_semantics<parallel>, #tpu.dimension_semantics<arbitrary>, #tpu.dimension_semantics<arbitrary>], iteration_bounds = array<i64: 2, 2, 1>, scalar_prefetch = 0 : i64, scratch_operands = 3 : i64, tpu.core_type = #tpu.core_type<tc>, window_params = [{transform_indices = @transform_0, window_bounds = array<i64: 1, 256, 4>}, {pipeline_mode = #tpu.pipeline_mode<synchronous>, transform_indices = @transform_1, window_bounds = array<i64: 4, 128>}, {pipeline_mode = #tpu.pipeline_mode<synchronous>, transform_indices = @transform_2, window_bounds = array<i64: 1, 128>}, {pipeline_mode = #tpu.pipeline_mode<synchronous>, transform_indices = @transform_3, window_bounds = array<i64: 128, 128>}, {pipeline_mode = #tpu.pipeline_mode<synchronous>, transform_indices = @transform_4, window_bounds = array<i64: 1, 128>}, {pipeline_mode = #tpu.pipeline_mode<synchronous>, transform_indices = @transform_5, window_bounds = array<i64: 1, 128>}, {transform_indices = @transform_6, window_bounds = array<i64: 1, 256, 128>}]} {
    %c0_i32 = arith.constant 0 : i32
    %0 = arith.cmpi eq, %arg1, %c0_i32 : i32
    %1 = arith.extui %0 : i1 to i32
    %c0_i32_0 = arith.constant 0 : i32
    %2 = arith.cmpi ne, %1, %c0_i32_0 : i32
    scf.if %2 {
      %c0_i32_2 = arith.constant 0 : i32
      %6 = arith.cmpi eq, %arg2, %c0_i32_2 : i32
      %7 = arith.extui %6 : i1 to i32
      %c0_i32_3 = arith.constant 0 : i32
      %8 = arith.cmpi ne, %7, %c0_i32_3 : i32
      scf.if %8 {
        %cst_19 = arith.constant 0.000000e+00 : f32
        %30 = vector.broadcast %cst_19 : f32 to vector<2x128xf32>
        %c0_20 = arith.constant 0 : index
        %c0_21 = arith.constant 0 : index
        %31 = vector.load %arg11[%c0_20, %c0_21] : memref<2x128xf32, #tpu.memory_space<vmem>>, vector<2x128xf32>
        tpu.vector_store %arg11[%c0_20, %c0_21], %30 {strides = array<i32>} : memref<2x128xf32, #tpu.memory_space<vmem>>, vector<2x128xf32>,
      } else {
      }
      %c0 = arith.constant 0 : index
      %c0_4 = arith.constant 0 : index
      %c0_5 = arith.constant 0 : index
      %9 = vector.load %arg3[%c0, %c0_4, %c0_5] : memref<1x256x4xf32, #tpu.memory_space<vmem>>, vector<1x256x4xf32>
      %10 = vector.shape_cast %9 : vector<1x256x4xf32> to vector<256x4xf32>
      %11 = arith.truncf %10 : vector<256x4xf32> to vector<256x4xbf16>
      %c0_6 = arith.constant 0 : index
      %c0_7 = arith.constant 0 : index
      %12 = vector.load %arg4[%c0_6, %c0_7] : memref<4x128xbf16, #tpu.memory_space<vmem>>, vector<4x128xbf16>
      %cst = arith.constant dense<0.000000e+00> : vector<256x128xf32>
      %13 = tpu.matmul %11, %12, %cst {dimension_numbers = #tpu.dot_dimension_numbers<[1], [0], [0], [1], [0, 0, 1, 1], [], []>} : vector<256x4xbf16>, vector<4x128xbf16>, vector<256x128xf32> -> vector<256x128xf32>
      %14 = arith.truncf %13 : vector<256x128xf32> to vector<256x128xbf16>
      %15 = arith.index_cast %arg2 : i32 to index
      %c0_8 = arith.constant 0 : index
      %c0_9 = arith.constant 0 : index
      %16 = vector.load %arg10[%15, %c0_8, %c0_9] : memref<1x256x128xbf16, #tpu.memory_space<vmem>>, vector<1x256x128xbf16>
      %17 = vector.shape_cast %16 : vector<1x256x128xbf16> to vector<256x128xbf16>
      %18 = vector.shape_cast %14 : vector<256x128xbf16> to vector<1x256x128xbf16>
      tpu.vector_store %arg10[%15, %c0_8, %c0_9], %18 {strides = array<i32>} : memref<1x256x128xbf16, #tpu.memory_space<vmem>>, vector<1x256x128xbf16>,
      %c0_10 = arith.constant 0 : index
      %c0_11 = arith.constant 0 : index
      %19 = vector.load %arg11[%c0_10, %c0_11] : memref<2x128xf32, #tpu.memory_space<vmem>>, vector<1x128xf32>
      %cst_12 = arith.constant dense<0.000000e+00> : vector<128xf32>
      %20 = vector.multi_reduction <add>, %13, %cst_12 [0] : vector<256x128xf32> to vector<128xf32>
      %21 = vector.shape_cast %20 : vector<128xf32> to vector<1x128xf32>
      %22 = arith.addf %19, %21 : vector<1x128xf32>
      %c0_13 = arith.constant 0 : index
      %c0_14 = arith.constant 0 : index
      %23 = vector.load %arg11[%c0_13, %c0_14] : memref<2x128xf32, #tpu.memory_space<vmem>>, vector<1x128xf32>
      tpu.vector_store %arg11[%c0_13, %c0_14], %22 {strides = array<i32>} : memref<2x128xf32, #tpu.memory_space<vmem>>, vector<1x128xf32>,
      %c1 = arith.constant 1 : index
      %c0_15 = arith.constant 0 : index
      %24 = vector.load %arg11[%c1, %c0_15] : memref<2x128xf32, #tpu.memory_space<vmem>>, vector<1x128xf32>
      %25 = arith.mulf %13, %13 : vector<256x128xf32>
      %cst_16 = arith.constant dense<0.000000e+00> : vector<128xf32>
      %26 = vector.multi_reduction <add>, %25, %cst_16 [0] : vector<256x128xf32> to vector<128xf32>
      %27 = vector.shape_cast %26 : vector<128xf32> to vector<1x128xf32>
      %28 = arith.addf %24, %27 : vector<1x128xf32>
      %c1_17 = arith.constant 1 : index
      %c0_18 = arith.constant 0 : index
      %29 = vector.load %arg11[%c1_17, %c0_18] : memref<2x128xf32, #tpu.memory_space<vmem>>, vector<1x128xf32>
      tpu.vector_store %arg11[%c1_17, %c0_18], %28 {strides = array<i32>} : memref<2x128xf32, #tpu.memory_space<vmem>>, vector<1x128xf32>,
    } else {
    }
    %c1_i32 = arith.constant 1 : i32
    %3 = arith.cmpi eq, %arg1, %c1_i32 : i32
    %4 = arith.extui %3 : i1 to i32
    %c0_i32_1 = arith.constant 0 : i32
    %5 = arith.cmpi ne, %4, %c0_i32_1 : i32
    scf.if %5 {
      %c0_i32_2 = arith.constant 0 : i32
      %6 = arith.cmpi eq, %arg2, %c0_i32_2 : i32
      %7 = arith.extui %6 : i1 to i32
      %c0_i32_3 = arith.constant 0 : i32
      %8 = arith.cmpi ne, %7, %c0_i32_3 : i32
      scf.if %8 {
        %c0_11 = arith.constant 0 : index
        %c0_12 = arith.constant 0 : index
        %22 = vector.load %arg11[%c0_11, %c0_12] : memref<2x128xf32, #tpu.memory_space<vmem>>, vector<2x128xf32>
        %c0_13 = arith.constant 0 : index
        %c0_14 = arith.constant 0 : index
        %23 = vector.load %arg6[%c0_13, %c0_14] : memref<128x128xf32, #tpu.memory_space<vmem>>, vector<128x128xf32>
        %cst = arith.constant dense<0.000000e+00> : vector<2x128xf32>
        %24 = tpu.matmul %22, %23, %cst {dimension_numbers = #tpu.dot_dimension_numbers<[1], [0], [0], [1], [0, 0, 1, 1], [], []>} : vector<2x128xf32>, vector<128x128xf32>, vector<2x128xf32> -> vector<2x128xf32>
        %25 = vector.extract_strided_slice %24 {offsets = [0, 0], sizes = [1, 128], strides = [1, 1]} : vector<2x128xf32> to vector<1x128xf32>
        %cst_15 = arith.constant 3.906250e-03 : f32
        %26 = vector.broadcast %cst_15 : f32 to vector<1x128xf32>
        %27 = arith.mulf %25, %26 : vector<1x128xf32>
        %28 = vector.extract_strided_slice %24 {offsets = [1, 0], sizes = [1, 128], strides = [1, 1]} : vector<2x128xf32> to vector<1x128xf32>
        %cst_16 = arith.constant 3.906250e-03 : f32
        %29 = vector.broadcast %cst_16 : f32 to vector<1x128xf32>
        %30 = arith.mulf %28, %29 : vector<1x128xf32>
        %31 = arith.mulf %27, %27 : vector<1x128xf32>
        %32 = arith.subf %30, %31 : vector<1x128xf32>
        %cst_17 = arith.constant 0.000000e+00 : f32
        %33 = vector.broadcast %cst_17 : f32 to vector<1x128xf32>
        %34 = arith.maximumf %32, %33 : vector<1x128xf32>
        %cst_18 = arith.constant 9.99999974E-6 : f32
        %35 = vector.broadcast %cst_18 : f32 to vector<1x128xf32>
        %36 = arith.addf %34, %35 : vector<1x128xf32>
        %37 = math.rsqrt %36 : vector<1x128xf32>
        %c0_19 = arith.constant 0 : index
        %c0_20 = arith.constant 0 : index
        %38 = vector.load %arg7[%c0_19, %c0_20] : memref<1x128xf32, #tpu.memory_space<vmem>>, vector<1x128xf32>
        %39 = arith.mulf %37, %38 : vector<1x128xf32>
        %c0_21 = arith.constant 0 : index
        %c0_22 = arith.constant 0 : index
        %40 = vector.load %arg12[%c0_21, %c0_22] : memref<2x128xf32, #tpu.memory_space<vmem>>, vector<1x128xf32>
        tpu.vector_store %arg12[%c0_21, %c0_22], %39 {strides = array<i32>} : memref<2x128xf32, #tpu.memory_space<vmem>>, vector<1x128xf32>,
        %c0_23 = arith.constant 0 : index
        %c0_24 = arith.constant 0 : index
        %41 = vector.load %arg8[%c0_23, %c0_24] : memref<1x128xf32, #tpu.memory_space<vmem>>, vector<1x128xf32>
        %42 = arith.mulf %27, %39 : vector<1x128xf32>
        %43 = arith.subf %41, %42 : vector<1x128xf32>
        %c1_25 = arith.constant 1 : index
        %c0_26 = arith.constant 0 : index
        %44 = vector.load %arg12[%c1_25, %c0_26] : memref<2x128xf32, #tpu.memory_space<vmem>>, vector<1x128xf32>
        tpu.vector_store %arg12[%c1_25, %c0_26], %43 {strides = array<i32>} : memref<2x128xf32, #tpu.memory_space<vmem>>, vector<1x128xf32>,
      } else {
      }
      %9 = arith.index_cast %arg2 : i32 to index
      %c0 = arith.constant 0 : index
      %c0_4 = arith.constant 0 : index
      %10 = vector.load %arg10[%9, %c0, %c0_4] : memref<1x256x128xbf16, #tpu.memory_space<vmem>>, vector<1x256x128xbf16>
      %11 = vector.shape_cast %10 : vector<1x256x128xbf16> to vector<256x128xbf16>
      %12 = arith.extf %11 : vector<256x128xbf16> to vector<256x128xf32>
      %c0_5 = arith.constant 0 : index
      %c0_6 = arith.constant 0 : index
      %13 = vector.load %arg12[%c0_5, %c0_6] : memref<2x128xf32, #tpu.memory_space<vmem>>, vector<1x128xf32>
      %14 = vector.broadcast %13 : vector<1x128xf32> to vector<256x128xf32>
      %15 = arith.mulf %12, %14 : vector<256x128xf32>
      %c1 = arith.constant 1 : index
      %c0_7 = arith.constant 0 : index
      %16 = vector.load %arg12[%c1, %c0_7] : memref<2x128xf32, #tpu.memory_space<vmem>>, vector<1x128xf32>
      %17 = vector.broadcast %16 : vector<1x128xf32> to vector<256x128xf32>
      %18 = arith.addf %15, %17 : vector<256x128xf32>
      %c0_8 = arith.constant 0 : index
      %c0_9 = arith.constant 0 : index
      %c0_10 = arith.constant 0 : index
      %19 = vector.load %arg9[%c0_8, %c0_9, %c0_10] : memref<1x256x128xf32, #tpu.memory_space<vmem>>, vector<1x256x128xf32>
      %20 = vector.shape_cast %19 : vector<1x256x128xf32> to vector<256x128xf32>
      %21 = vector.shape_cast %18 : vector<256x128xf32> to vector<1x256x128xf32>
      tpu.vector_store %arg9[%c0_8, %c0_9, %c0_10], %21 {strides = array<i32>} : memref<1x256x128xf32, #tpu.memory_space<vmem>>, vector<1x256x128xf32>,
    } else {
    }
    return
  }
  func.func @transform_0(%arg0: i32, %arg1: i32, %arg2: i32) -> (i32, i32, i32) {
    %c1_i32 = arith.constant 1 : i32
    %0 = arith.subi %c1_i32, %arg1 : i32
    %1 = arith.muli %arg2, %0 : i32
    %c0_i32 = arith.constant 0 : i32
    %2 = arith.muli %c0_i32, %arg1 : i32
    %3 = arith.addi %1, %2 : i32
    %c0_i32_0 = arith.constant 0 : i32
    %c0_i32_1 = arith.constant 0 : i32
    return %arg0, %3, %c0_i32_0 : i32, i32, i32
  }
  func.func @transform_1(%arg0: i32, %arg1: i32, %arg2: i32) -> (i32, i32) {
    %c0_i32 = arith.constant 0 : i32
    %c0_i32_0 = arith.constant 0 : i32
    %c0_i32_1 = arith.constant 0 : i32
    return %c0_i32, %c0_i32_0 : i32, i32
  }
  func.func @transform_2(%arg0: i32, %arg1: i32, %arg2: i32) -> (i32, i32) {
    %c0_i32 = arith.constant 0 : i32
    %c0_i32_0 = arith.constant 0 : i32
    %c0_i32_1 = arith.constant 0 : i32
    return %c0_i32, %c0_i32_0 : i32, i32
  }
  func.func @transform_3(%arg0: i32, %arg1: i32, %arg2: i32) -> (i32, i32) {
    %c0_i32 = arith.constant 0 : i32
    %c0_i32_0 = arith.constant 0 : i32
    %c0_i32_1 = arith.constant 0 : i32
    return %c0_i32, %c0_i32_0 : i32, i32
  }
  func.func @transform_4(%arg0: i32, %arg1: i32, %arg2: i32) -> (i32, i32) {
    %c0_i32 = arith.constant 0 : i32
    %c0_i32_0 = arith.constant 0 : i32
    %c0_i32_1 = arith.constant 0 : i32
    return %c0_i32, %c0_i32_0 : i32, i32
  }
  func.func @transform_5(%arg0: i32, %arg1: i32, %arg2: i32) -> (i32, i32) {
    %c0_i32 = arith.constant 0 : i32
    %c0_i32_0 = arith.constant 0 : i32
    %c0_i32_1 = arith.constant 0 : i32
    return %c0_i32, %c0_i32_0 : i32, i32
  }
  func.func @transform_6(%arg0: i32, %arg1: i32, %arg2: i32) -> (i32, i32, i32) {
    %0 = arith.muli %arg2, %arg1 : i32
    %c0_i32 = arith.constant 0 : i32
    %c0_i32_0 = arith.constant 0 : i32
    return %arg0, %0, %c0_i32 : i32, i32, i32
  }
}

</mosaic_0001>

<bundles_post_ra>
// kernel: tpu_custom_call.1
= control target key start
LH: loop header
LB: loop body
LE: loop exit
PB: predicated region body
PF: predicated region fallthrough
CT: control target
= control target key end

     0   :  { %11 = vsyncpa [#allocation6], 0  ;;  %s1845_s0 = inlined_call_operand.vmem [shape: f32[2,256,4], index: 0, kind: input, shape index: {}]   ;;  %s1846_s1 = inlined_call_operand.vmem [shape: bf16[4,128], index: 1, kind: input, shape index: {}]   ;;  %s1847_s2 = inlined_call_operand.vmem [shape: f32[1,128], index: 2, kind: input, shape index: {}]   ;;  %s1848_s3 = inlined_call_operand.vmem [shape: f32[128,128], index: 3, kind: input, shape index: {}]   ;;  %s1849_s4 = inlined_call_operand.vmem [shape: f32[1,128], index: 4, kind: input, shape index: {}]   ;;  %s1850_s5 = inlined_call_operand.vmem [shape: f32[1,128], index: 5, kind: input, shape index: {}]   ;;  %s1851_s6 = inlined_call_operand.hbm [shape: f32[2,256,128], index: 6, kind: output, shape index: {}]  }
   0x1   :  { %13 = vsyncpa [#allocation6 + $0x1], 0  ;;  %s1492_s21 = smov 0   ;;  %s1494_s22 = smov 0  }
   0x2   :  { %s1496_s23 = smov 0   ;;  %s1498_s2 = smov 0  }
   0x3   :  { %s1500_s24 = smov 0   ;;  %s1502_s25 = smov 0  }
   0x4   :  { %s1504_s26 = smov 0   ;;  %s1506_s27 = smov 0  }
   0x5 LB: > { %s1108_s28 = sadd.s32 4294967295, %s1448_s27   ;;  %s1109_s29 = sadd.s32 4294967294, %s1448_s27   ;;  %s1448_s27 = sphi %s1506_s27, %s19_s27   ;;  %s1444_s26 = sphi %s1504_s26, %s1860_s26   ;;  %s1440_s25 = sphi %s1502_s25, %s1859_s25   ;;  %s1436_s24 = sphi %s1500_s24, %s1858_s24   ;;  %s1432_s2 = sphi %s1498_s2, %s1857_s2   ;;  %s1428_s23 = sphi %s1496_s23, %s1856_s23   ;;  %s1424_s22 = sphi %s1494_s22, %s1855_s22   ;;  %s1420_s21 = sphi %s1492_s21, %s1854_s21  }
   0x6   : > { %s34_s30 = sadd.s32 1, %s1440_s25  ;;  %s38_s7 = sadd.s32 1, %s1444_s26 }
   0x7   : > { %p36_p0 = scmp.ge.s32.totalorder %s34_s30, 2  ;;  %p196_p1 = scmp.ne.s32.totalorder %s1428_s23, %s1424_s22 }
   0x8   : > { %p197_p2 = scmp.eq.s32.totalorder %s1108_s28, 3  ;;  %p202_p4 = scmp.ne.s32.totalorder %s1424_s22, %s1420_s21 }
   0x9   : > { %s1862_s30 = smov (%p36_p0, %s34_s30), 0  ;;  %s1864_s7 = smov (!%p36_p0, %s38_s7), %s1444_s26 }
   0xa   : > { %p1541_p3 = por %p197_p2, %p196_p1  ;;  %p40_p5 = scmp.ge.s32.totalorder %s1864_s7, 2 }
   0xb   : > { %p203_p6 = scmp.eq.s32.totalorder %s1109_s29, 3  ;;  %p1112_p7 = scmp.ge.s32.totalorder %s1448_s27, 1 }
   0xc   : > { %p253_p8 = scmp.lt.s32.totalorder %s1448_s27, 5  ;;  %s1866_s7 = smov (%p40_p5, %s1864_s7), 0 }
   0xd   : > { %p1551_p9 = por %p203_p6, %p202_p4  ;;  %s181_s10 = ssub.s32 %s1444_s26, %s1866_s7 }
   0xe   : > { %p254_p10 = pnand %p1112_p7, %p253_p8  ;;  %s186_s11 = sadd.s32 1, %s1428_s23 }
   0xf   : > { %p184_p11 = scmp.eq.s32.totalorder %s181_s10, 0  ;;  %s286_s13 = sand.u32 (!%p254_p10), 1, %s1424_s22  }
  0x10   : > { %257 = sbr.rel (%p254_p10) target bundleno = 657 (0x291), region = 44  ;;  %p292_p12 = scmp.lt.s32.totalorder (!%p254_p10), %s1436_s24, 1 }
  0x11   : > { %s1559_s12 = scalar_select %p184_p11, %s1428_s23, %s186_s11  }
  0x12   : > { %s1113_s14 = sshll.u32 (!%p254_p10), %s286_s13, 8  ;;  %p1116_p13 = scmp.ne.s32.totalorder (!%p254_p10), %s1432_s2, 0 }
  0x13   : > { %s1571_s20 = scalar_lea.vmem (!%p254_p10), [#allocation5], %s1113_s14 }
  0x17   : > { %s293_s15 = scalar_select %p292_p12, %s1436_s24, 1 }
  0x18   : > { %309 = sbr.rel (%p1116_p13) target bundleno = 325 (0x145), region = 48  ;;  %v363_v0 = vld [vmem:[%s1846_s1] sm:$0x3] (!%p1116_p13)  ;;  %vm413_vm0 = vcmask (!%p1116_p13), 1041408   ;;  %vm364_vm1 = vcmask (!%p1116_p13), 31744   ;;  %v1450_v50 = vmov (!%p1116_p13), 0.0  }
  0x19   : > { %s1142_s16 = sshll.u32 %s293_s15, 8  ;;  %1273 = vmatprep.subr.msk.bf16.mxu0 (!%p1116_p13), %vm413_vm0, %v363_v0  ;;  %v415_v3 = vsel (!%p1116_p13), %vm413_vm0, %v363_v0, 0  ;;  %1274 = vmatprep.subr.msk.bf16.mxu1 (!%p1116_p13), %vm413_vm0, %v363_v0  ;;  %314 = vst [vmem:[#allocation3] sm:$0x3] (!%p1116_p13), %v1450_v50 }
  0x1a   : > { %s1569_s19 = scalar_lea.vmem %s1845_s0, %s1142_s16  ;;  %1179 = vmatpush3.bf16.msra.mxu0 (!%p1116_p13), %v415_v3  ;;  %1272 = vmatpush3.bf16.msra.mxu1 (!%p1116_p13), %v415_v3 }
  0x1b   : > { %v315_v1 = vld [vmem:[%s1569_s19] sm:$0xff] (!%p1116_p13)  ;;  %v316_v2 = vld [vmem:[%s1569_s19 + $0x8] sm:$0xff] (!%p1116_p13)  ;;  %v317_v5 = vld [vmem:[%s1569_s19 + $0x10] sm:$0xff] (!%p1116_p13) }
  0x1c   : > { %v347_v4 = vpack.c.bf16 (!%p1116_p13), %v316_v2, %v315_v1  ;;  %v318_v6 = vld [vmem:[%s1569_s19 + $0x18] sm:$0xff] (!%p1116_p13)  ;;  %v319_v7 = vld [vmem:[%s1569_s19 + $0x20] sm:$0xff] (!%p1116_p13)  ;;  %v320_v9 = vld [vmem:[%s1569_s19 + $0x28] sm:$0xff] (!%p1116_p13) }
  0x1d   : > { %v348_v8 = vpack.c.bf16 (!%p1116_p13), %v318_v6, %v317_v5  ;;  %v349_v10 = vpack.c.bf16 (!%p1116_p13), %v320_v9, %v319_v7  ;;  %v321_v11 = vld [vmem:[%s1569_s19 + $0x30] sm:$0xff] (!%p1116_p13)  ;;  %v322_v12 = vld [vmem:[%s1569_s19 + $0x38] sm:$0xff] (!%p1116_p13)  ;;  %v323_v13 = vld [vmem:[%s1569_s19 + $0x40] sm:$0xff] (!%p1116_p13) }
  0x1e   : > { %1180 = vmatprep.mubr.msk.bf16.mxu0 (!%p1116_p13), %vm364_vm1, %v347_v4  ;;  %v331_v14 = vld [vmem:[%s1569_s19 + $0x80] sm:$0xff] (!%p1116_p13)  ;;  %v332_v15 = vld [vmem:[%s1569_s19 + $0x88] sm:$0xff] (!%p1116_p13)  ;;  %v333_v16 = vld [vmem:[%s1569_s19 + $0x90] sm:$0xff] (!%p1116_p13)  ;;  %v350_v24 = vpack.c.bf16 (!%p1116_p13), %v322_v12, %v321_v11 }
  0x1f   : > { %1181 = vmatmul.mubr.msk.bf16.vlgmr.msra.gmra.mrb[0].mxu0 %vm364_vm1, %v348_v8  ;;  %v334_v17 = vld [vmem:[%s1569_s19 + $0x98] sm:$0xff]  ;;  %v324_v18 = vld [vmem:[%s1569_s19 + $0x48] sm:$0xff]  ;;  %v355_v19 = vpack.c.bf16 %v332_v15, %v331_v14  ;;  %v335_v21 = vld [vmem:[%s1569_s19 + $0xa0] sm:$0xff] }
  0x20   : > { %1184 = vmatprep.mubr.msk.bf16.mxu0 %vm364_vm1, %v349_v10  ;;  %v356_v20 = vpack.c.bf16 %v334_v17, %v333_v16  ;;  %v336_v22 = vld [vmem:[%s1569_s19 + $0xa8] sm:$0xff]  ;;  %v351_v25 = vpack.c.bf16 %v324_v18, %v323_v13  ;;  %v337_v26 = vld [vmem:[%s1569_s19 + $0xb0] sm:$0xff]  ;;  %v338_v27 = vld [vmem:[%s1569_s19 + $0xb8] sm:$0xff] }
  0x21   : > { %v357_v23 = vpack.c.bf16 %v336_v22, %v335_v21  ;;  %1196 = vmatprep.mubr.msk.bf16.mxu1 %vm364_vm1, %v355_v19  ;;  %v339_v28 = vld [vmem:[%s1569_s19 + $0xc0] sm:$0xff]  ;;  %v340_v29 = vld [vmem:[%s1569_s19 + $0xc8] sm:$0xff]  ;;  %v325_v30 = vld [vmem:[%s1569_s19 + $0x50] sm:$0xff]  ;;  %v358_v32 = vpack.c.bf16 %v338_v27, %v337_v26 }
  0x22   : > { %1197 = vmatmul.mubr.msk.bf16.vlgmr.msra.gmra.mrb[0].mxu1 %vm364_vm1, %v356_v20  ;;  %v326_v31 = vld [vmem:[%s1569_s19 + $0x58] sm:$0xff]  ;;  %v327_v33 = vld [vmem:[%s1569_s19 + $0x60] sm:$0xff]  ;;  %v328_v34 = vld [vmem:[%s1569_s19 + $0x68] sm:$0xff]  ;;  %v359_v35 = vpack.c.bf16 %v340_v29, %v339_v28 }
  0x23   : > { %1200 = vmatprep.mubr.msk.bf16.mxu1 %vm364_vm1, %v357_v23  ;;  %v352_v36 = vpack.c.bf16 %v326_v31, %v325_v30  ;;  %v353_v37 = vpack.c.bf16 %v328_v34, %v327_v33  ;;  %v341_v38 = vld [vmem:[%s1569_s19 + $0xd0] sm:$0xff]  ;;  %v342_v39 = vld [vmem:[%s1569_s19 + $0xd8] sm:$0xff]  ;;  %v343_v40 = vld [vmem:[%s1569_s19 + $0xe0] sm:$0xff] }
  0x24   : > { %v344_v41 = vld [vmem:[%s1569_s19 + $0xe8] sm:$0xff]  ;;  %v329_v42 = vld [vmem:[%s1569_s19 + $0x70] sm:$0xff]  ;;  %v330_v43 = vld [vmem:[%s1569_s19 + $0x78] sm:$0xff]  ;;  %v360_v44 = vpack.c.bf16 %v342_v39, %v341_v38 }
  0x25   : > { %v361_v45 = vpack.c.bf16 %v344_v41, %v343_v40  ;;  %v354_v46 = vpack.c.bf16 %v330_v43, %v329_v42  ;;  %v345_v47 = vld [vmem:[%s1569_s19 + $0xf0] sm:$0xff]  ;;  %v346_v48 = vld [vmem:[%s1569_s19 + $0xf8] sm:$0xff] }
  0x26   : > { %v362_v49 = vpack.c.bf16 %v346_v48, %v345_v47 }
  0x27   : > { %1185 = vmatmul.mubr.msk.bf16.gmra.mrb[4].mxu0 %vm364_vm1, %v350_v24 }
  0x28   : > { %1188 = vmatprep.mubr.msk.bf16.mxu0 %vm364_vm1, %v351_v25 }
  0x2a   : > { %1201 = vmatmul.mubr.msk.bf16.gmra.mrb[4].mxu1 %vm364_vm1, %v358_v32 }
  0x2b   : > { %1204 = vmatprep.mubr.msk.bf16.mxu1 %vm364_vm1, %v359_v35 }
  0x2f   : > { %1189 = vmatmul.mubr.msk.bf16.gmra.mrb[8].mxu0 %vm364_vm1, %v352_v36 }
  0x30   : > { %1192 = vmatprep.mubr.msk.bf16.mxu0 %vm364_vm1, %v353_v37 }
  0x32   : > { %1205 = vmatmul.mubr.msk.bf16.gmra.mrb[8].mxu1 %vm364_vm1, %v360_v44 }
  0x33   : > { %1208 = vmatprep.mubr.msk.bf16.mxu1 %vm364_vm1, %v361_v45 }
  0x37   : > { %1193 = vmatmul.mubr.msk.bf16.gmra.mrb[12].mxu0 %vm364_vm1, %v354_v46 }
  0x3a   : > { %1209 = vmatmul.mubr.msk.bf16.gmra.mrb[12].mxu1 %vm364_vm1, %v362_v49 }
  0xf2   : > { %v1182_v51 = vpop.f32.mrb[0].mxu0 }
  0xf3   : > { %v451_v52 = vpop.f32.mrb[1].mxu0  ;;  %v656_v61 = vmul.f32 %v1182_v51, %v1182_v51 }
  0xf4   : > { %v1183_v53 = vpop.f32.mrb[2].mxu0  ;;  %v654_v56 = vmul.f32 %v451_v52, %v451_v52 }
  0xf5   : > { %v579_v54 = vpack.c.bf16 %v1183_v53, %v1182_v51  ;;  %v454_v55 = vpop.f32.mrb[3].mxu0  ;;  %v1625_v60 = vpop.f32.mrb[0].mxu1  ;;  %v657_v2 = vmul.f32 %v1183_v53, %v1183_v53 }
  0xf6   : > { %v578_v57 = vpack.c.bf16 %v454_v55, %v451_v52  ;;  %v614_v58 = vadd.f32 %v454_v55, %v451_v52  ;;  %v655_v59 = vmul.f32 %v454_v55, %v454_v55  ;;  %v1627_v0 = vpop.f32.mrb[1].mxu1 }
  0xf7   : > { %598 = vst [vmem:[#allocation2 + $0x8] sm:$0xff] %v579_v54  ;;  %v1629_v1 = vpop.f32.mrb[2].mxu1 }
  0xf8   : > { %597 = vst [vmem:[#allocation2] sm:$0xff] %v578_v57  ;;  %v615_v62 = vadd.f32 %v1182_v51, %v614_v58  ;;  %v686_v63 = vadd.f32 %v655_v59, %v654_v56  ;;  %v587_v6 = vpack.c.bf16 %v1629_v1, %v1625_v60  ;;  %v1633_v7 = vpop.f32.mrb[3].mxu1 }
  0xf9   : > { %v586_v9 = vpack.c.bf16 %v1633_v7, %v1627_v0 }
  0xfa   : > { %v687_v3 = vadd.f32 %v686_v63, %v656_v61  ;;  %v1186_v4 = vpop.f32.mrb[4].mxu0  ;;  %v616_v5 = vadd.f32 %v1183_v53, %v615_v62  ;;  %606 = vst [vmem:[#allocation2 + $0x48] sm:$0xff] %v587_v6 }
  0xfb   : > { %v467_v8 = vpop.f32.mrb[5].mxu0  ;;  %605 = vst [vmem:[#allocation2 + $0x40] sm:$0xff] %v586_v9  ;;  %v660_v21 = vmul.f32 %v1186_v4, %v1186_v4 }
  0xfc   : > { %v617_v10 = vadd.f32 %v616_v5, %v467_v8  ;;  %v658_v11 = vmul.f32 %v467_v8, %v467_v8  ;;  %v688_v12 = vadd.f32 %v687_v3, %v657_v2  ;;  %v1187_v13 = vpop.f32.mrb[6].mxu0 }
  0xfd   : > { %v581_v14 = vpack.c.bf16 %v1187_v13, %v1186_v4  ;;  %v470_v15 = vpop.f32.mrb[7].mxu0  ;;  %v1637_v20 = vpop.f32.mrb[4].mxu1  ;;  %v661_v26 = vmul.f32 %v1187_v13, %v1187_v13 }
  0xfe   : > { %v689_v16 = vadd.f32 %v688_v12, %v658_v11  ;;  %v580_v17 = vpack.c.bf16 %v470_v15, %v467_v8  ;;  %v618_v18 = vadd.f32 %v617_v10, %v470_v15  ;;  %v659_v19 = vmul.f32 %v470_v15, %v470_v15  ;;  %v1639_v24 = vpop.f32.mrb[5].mxu1 }
  0xff   : > { %600 = vst [vmem:[#allocation2 + $0x18] sm:$0xff] %v581_v14  ;;  %v1641_v25 = vpop.f32.mrb[6].mxu1 }
 0x100   : > { %599 = vst [vmem:[#allocation2 + $0x10] sm:$0xff] %v580_v17  ;;  %v619_v22 = vadd.f32 %v1186_v4, %v618_v18  ;;  %v690_v23 = vadd.f32 %v689_v16, %v659_v19  ;;  %v589_v30 = vpack.c.bf16 %v1641_v25, %v1637_v20  ;;  %v1645_v31 = vpop.f32.mrb[7].mxu1 }
 0x101   : > { %v588_v33 = vpack.c.bf16 %v1645_v31, %v1639_v24 }
 0x102   : > { %v691_v27 = vadd.f32 %v690_v23, %v660_v21  ;;  %v1190_v28 = vpop.f32.mrb[8].mxu0  ;;  %v620_v29 = vadd.f32 %v1187_v13, %v619_v22  ;;  %608 = vst [vmem:[#allocation2 + $0x58] sm:$0xff] %v589_v30  ;;  %v670_v13 = vmul.f32 %v1627_v0, %v1627_v0 }
 0x103   : > { %v483_v32 = vpop.f32.mrb[9].mxu0  ;;  %607 = vst [vmem:[#allocation2 + $0x50] sm:$0xff] %v588_v33  ;;  %v664_v45 = vmul.f32 %v1190_v28, %v1190_v28  ;;  %v673_v33 = vmul.f32 %v1629_v1, %v1629_v1 }
 0x104   : > { %v621_v34 = vadd.f32 %v620_v29, %v483_v32  ;;  %v662_v35 = vmul.f32 %v483_v32, %v483_v32  ;;  %v692_v36 = vadd.f32 %v691_v27, %v661_v26  ;;  %v1191_v37 = vpop.f32.mrb[10].mxu0  ;;  %v672_v29 = vmul.f32 %v1625_v60, %v1625_v60 }
 0x105   : > { %v583_v38 = vpack.c.bf16 %v1191_v37, %v1190_v28  ;;  %v486_v39 = vpop.f32.mrb[11].mxu0  ;;  %v1649_v44 = vpop.f32.mrb[8].mxu1  ;;  %v665_v50 = vmul.f32 %v1191_v37, %v1191_v37 }
 0x106   : > { %v693_v40 = vadd.f32 %v692_v36, %v662_v35  ;;  %v582_v41 = vpack.c.bf16 %v486_v39, %v483_v32  ;;  %v622_v42 = vadd.f32 %v621_v34, %v486_v39  ;;  %v663_v43 = vmul.f32 %v486_v39, %v486_v39  ;;  %v1651_v48 = vpop.f32.mrb[9].mxu1 }
 0x107   : > { %602 = vst [vmem:[#allocation2 + $0x28] sm:$0xff] %v583_v38  ;;  %v1653_v49 = vpop.f32.mrb[10].mxu1  ;;  %v674_v35 = vmul.f32 %v1639_v24, %v1639_v24  ;;  %v675_v39 = vmul.f32 %v1645_v31, %v1645_v31 }
 0x108   : > { %601 = vst [vmem:[#allocation2 + $0x20] sm:$0xff] %v582_v41  ;;  %v623_v46 = vadd.f32 %v1190_v28, %v622_v42  ;;  %v694_v47 = vadd.f32 %v693_v40, %v663_v43  ;;  %v591_v54 = vpack.c.bf16 %v1653_v49, %v1649_v44  ;;  %v550_v55 = vpop.f32.mrb[11].mxu1  ;;  %v671_v28 = vmul.f32 %v1633_v7, %v1633_v7 }
 0x109   : > { %v590_v57 = vpack.c.bf16 %v550_v55, %v1651_v48 }
 0x10a   : > { %v695_v51 = vadd.f32 %v694_v47, %v664_v45  ;;  %v1194_v52 = vpop.f32.mrb[12].mxu0  ;;  %v624_v53 = vadd.f32 %v1191_v37, %v623_v46  ;;  %610 = vst [vmem:[#allocation2 + $0x68] sm:$0xff] %v591_v54 }
 0x10b   : > { %v499_v56 = vpop.f32.mrb[13].mxu0  ;;  %609 = vst [vmem:[#allocation2 + $0x60] sm:$0xff] %v590_v57  ;;  %v668_v9 = vmul.f32 %v1194_v52, %v1194_v52 }
 0x10c   : > { %v625_v58 = vadd.f32 %v624_v53, %v499_v56  ;;  %v666_v59 = vmul.f32 %v499_v56, %v499_v56  ;;  %v696_v61 = vadd.f32 %v695_v51, %v665_v50  ;;  %v1195_v62 = vpop.f32.mrb[14].mxu0  ;;  %v679_v50 = vmul.f32 %v550_v55, %v550_v55 }
 0x10d   : > { %v585_v63 = vpack.c.bf16 %v1195_v62, %v1194_v52  ;;  %v502_v2 = vpop.f32.mrb[15].mxu0  ;;  %v1210_v8 = vpop.f32.mrb[12].mxu1  ;;  %v669_v15 = vmul.f32 %v1195_v62, %v1195_v62  ;;  %v680_v51 = vmul.f32 %v1649_v44, %v1649_v44  ;;  %v681_v53 = vmul.f32 %v1653_v49, %v1653_v49 }
 0x10e   : > { %v697_v3 = vadd.f32 %v696_v61, %v666_v59  ;;  %v584_v4 = vpack.c.bf16 %v502_v2, %v499_v56  ;;  %v626_v5 = vadd.f32 %v625_v58, %v502_v2  ;;  %v667_v6 = vmul.f32 %v502_v2, %v502_v2  ;;  %v563_v12 = vpop.f32.mrb[13].mxu1 }
 0x10f   : > { %604 = vst [vmem:[#allocation2 + $0x38] sm:$0xff] %v585_v63  ;;  %v1211_v14 = vpop.f32.mrb[14].mxu1  ;;  %v682_v56 = vmul.f32 %v563_v12, %v563_v12 }
 0x110   : > { %603 = vst [vmem:[#allocation2 + $0x30] sm:$0xff] %v584_v4  ;;  %v627_v10 = vadd.f32 %v1194_v52, %v626_v5  ;;  %v698_v11 = vadd.f32 %v697_v3, %v667_v6  ;;  %v593_v18 = vpack.c.bf16 %v1211_v14, %v1210_v8  ;;  %v566_v19 = vpop.f32.mrb[15].mxu1  ;;  %v685_v2 = vmul.f32 %v1211_v14, %v1211_v14 }
 0x111   : > { %v592_v21 = vpack.c.bf16 %v566_v19, %v563_v12  ;;  %v683_v61 = vmul.f32 %v566_v19, %v566_v19 }
 0x112   : > { %v699_v16 = vadd.f32 %v698_v11, %v668_v9  ;;  %v628_v17 = vadd.f32 %v1195_v62, %v627_v10  ;;  %612 = vst [vmem:[#allocation2 + $0x78] sm:$0xff] %v593_v18  ;;  %v684_v62 = vmul.f32 %v1210_v8, %v1210_v8 }
 0x113   : > { %611 = vst [vmem:[#allocation2 + $0x70] sm:$0xff] %v592_v21 }
 0x114   : > { %v629_v22 = vadd.f32 %v628_v17, %v1627_v0  ;;  %v700_v23 = vadd.f32 %v699_v16, %v669_v15  ;;  %v613_v16 = vld [vmem:[#allocation3] sm:$0x1] }
 0x116   : > { %v701_v26 = vadd.f32 %v700_v23, %v670_v13  ;;  %v630_v27 = vadd.f32 %v629_v22, %v1633_v7 }
 0x118   : > { %v631_v30 = vadd.f32 %v1625_v60, %v630_v27  ;;  %v702_v32 = vadd.f32 %v701_v26, %v671_v28  ;;  %v676_v60 = vmul.f32 %v1637_v20, %v1637_v20 }
 0x11a   : > { %v703_v34 = vadd.f32 %v702_v32, %v672_v29  ;;  %v632_v0 = vadd.f32 %v1629_v1, %v631_v30  ;;  %v677_v1 = vmul.f32 %v1641_v25, %v1641_v25 }
 0x11c   : > { %v633_v36 = vadd.f32 %v632_v0, %v1639_v24  ;;  %v704_v37 = vadd.f32 %v703_v34, %v673_v33  ;;  %v678_v24 = vmul.f32 %v1651_v48, %v1651_v48 }
 0x11e   : > { %v705_v38 = vadd.f32 %v704_v37, %v674_v35  ;;  %v634_v7 = vadd.f32 %v633_v36, %v1645_v31 }
 0x120   : > { %v635_v40 = vadd.f32 %v1637_v20, %v634_v7  ;;  %v706_v41 = vadd.f32 %v705_v38, %v675_v39 }
 0x122   : > { %v707_v42 = vadd.f32 %v706_v41, %v676_v60  ;;  %v636_v43 = vadd.f32 %v1641_v25, %v635_v40 }
 0x124   : > { %v637_v45 = vadd.f32 %v636_v43, %v1651_v48  ;;  %v708_v46 = vadd.f32 %v707_v42, %v677_v1 }
 0x126   : > { %v709_v47 = vadd.f32 %v708_v46, %v678_v24  ;;  %v638_v31 = vadd.f32 %v637_v45, %v550_v55 }
 0x128   : > { %v639_v20 = vadd.f32 %v1649_v44, %v638_v31  ;;  %v710_v52 = vadd.f32 %v709_v47, %v679_v50 }
 0x12a   : > { %v711_v54 = vadd.f32 %v710_v52, %v680_v51  ;;  %v640_v25 = vadd.f32 %v1653_v49, %v639_v20 }
 0x12c   : > { %v641_v57 = vadd.f32 %v640_v25, %v563_v12  ;;  %v712_v58 = vadd.f32 %v711_v54, %v681_v53 }
 0x12e   : > { %v713_v48 = vadd.f32 %v712_v58, %v682_v56  ;;  %v642_v59 = vadd.f32 %v641_v57, %v566_v19  ;;  %v653_v19 = vld [vmem:[#allocation3 + $0x1] sm:$0x1] }
 0x130   : > { %v643_v55 = vadd.f32 %v1210_v8, %v642_v59  ;;  %v714_v63 = vadd.f32 %v713_v48, %v683_v61 }
 0x132   : > { %v644_v3 = vadd.f32 %v1211_v14, %v643_v55  ;;  %v715_v4 = vadd.f32 %v714_v63, %v684_v62 }
 0x134   : > { %v645_v44 = vrot.slane %v644_v3, 4  ;;  %v716_v5 = vadd.f32 %v715_v4, %v685_v2 }
 0x136   : > { %v646_v6 = vadd.f32 %v645_v44, %v644_v3  ;;  %v717_v9 = vrot.slane %v716_v5, 4 }
 0x138   : > { %v647_v10 = vrot.slane %v646_v6, 2  ;;  %v718_v11 = vadd.f32 %v717_v9, %v716_v5 }
 0x13a   : > { %v648_v13 = vadd.f32 %v647_v10, %v646_v6  ;;  %v719_v49 = vrot.slane %v718_v11, 2 }
 0x13c   : > { %v649_v15 = vrot.slane %v648_v13, 1  ;;  %v720_v12 = vadd.f32 %v719_v49, %v718_v11 }
 0x13e   : > { %v650_v17 = vadd.f32 %v649_v15, %v648_v13  ;;  %v721_v18 = vrot.slane %v720_v12, 1 }
 0x140   : > { %v651_v21 = vadd.f32 %v650_v17, %v613_v16  ;;  %v722_v8 = vadd.f32 %v721_v18, %v720_v12 }
 0x142   : > { %652 = vst [vmem:[#allocation3] sm:$0x1] %v651_v21  ;;  %v723_v22 = vadd.f32 %v722_v8, %v653_v19 }
 0x144   : > { %724 = vst [vmem:[#allocation3 + $0x1] sm:$0x1] %v723_v22 }
 0x145 PF: > { %p1133_p0 = scmp.ne.s32.totalorder %s1432_s2, 1 }
 0x146   : > { %v734_v14 = vld [vmem:[%s1848_s3] sm:$0xff] (!%p1133_p0)  ;;  %v735_v23 = vld [vmem:[%s1848_s3 + $0x8] sm:$0xff] (!%p1133_p0)  ;;  %v736_v26 = vld [vmem:[%s1848_s3 + $0x10] sm:$0xff] (!%p1133_p0)  ;;  %v1451_v27 = vmov (!%p1133_p0), 0.0|0.0   ;;  %vm1452_vm2 = vmmov (!%p1133_p0), 0   ;;  %v1453_v30 = vmov (!%p1133_p0), 0.0  }
 0x147   : > { %728 = sbr.rel (%p1133_p0) target bundleno = 632 (0x278), region = 56  ;;  %1247 = vmatprep.subr.bf16.mxu0 (!%p1133_p0), %v1451_v27  ;;  %v1248_v28 = vpack.c.bf16 (!%p1133_p0), %v735_v23, %v734_v14  ;;  %v737_v29 = vld [vmem:[%s1848_s3 + $0x18] sm:$0xff] (!%p1133_p0)  ;;  %1244 = vmatprep.mubr.msk.f32.mxu0 (!%p1133_p0), %vm1452_vm2, %v1453_v30  ;;  %v738_v33 = vld [vmem:[%s1848_s3 + $0x20] sm:$0xff] (!%p1133_p0)  ;;  %v739_v34 = vld [vmem:[%s1848_s3 + $0x28] sm:$0xff] (!%p1133_p0) }
 0x148   : > { %v1251_v32 = vpack.c.bf16 (!%p1133_p0), %v737_v29, %v736_v26  ;;  %v1254_v0 = vpack.c.bf16 (!%p1133_p0), %v739_v34, %v738_v33  ;;  %v740_v35 = vld [vmem:[%s1848_s3 + $0x30] sm:$0xff] (!%p1133_p0)  ;;  %v741_v36 = vld [vmem:[%s1848_s3 + $0x38] sm:$0xff] (!%p1133_p0)  ;;  %v742_v38 = vld [vmem:[%s1848_s3 + $0x40] sm:$0xff] (!%p1133_p0) }
 0x149   : > { %1249 = vmatpush3.bf16.msra.mxu0 (!%p1133_p0), %v1248_v28  ;;  %v1257_v37 = vpack.c.bf16 (!%p1133_p0), %v741_v36, %v740_v35  ;;  %v743_v7 = vld [vmem:[%s1848_s3 + $0x48] sm:$0xff] (!%p1133_p0)  ;;  %v744_v60 = vld [vmem:[%s1848_s3 + $0x50] sm:$0xff] (!%p1133_p0)  ;;  %v745_v40 = vld [vmem:[%s1848_s3 + $0x58] sm:$0xff] (!%p1133_p0) }
 0x14a   : > { %1250 = vmatprep.subr.bf16.mxu0 (!%p1133_p0), %v1451_v27  ;;  %v1260_v39 = vpack.c.bf16 (!%p1133_p0), %v743_v7, %v742_v38  ;;  %v1263_v41 = vpack.c.bf16 (!%p1133_p0), %v745_v40, %v744_v60  ;;  %v746_v1 = vld [vmem:[%s1848_s3 + $0x60] sm:$0xff] (!%p1133_p0)  ;;  %v747_v42 = vld [vmem:[%s1848_s3 + $0x68] sm:$0xff] (!%p1133_p0)  ;;  %v748_v24 = vld [vmem:[%s1848_s3 + $0x70] sm:$0xff] (!%p1133_p0) }
 0x14b   : > { %v1266_v43 = vpack.c.bf16 (!%p1133_p0), %v747_v42, %v746_v1  ;;  %v749_v45 = vld [vmem:[%s1848_s3 + $0x78] sm:$0xff] (!%p1133_p0)  ;;  %v733_v47 = vld [vmem:[#allocation3] sm:$0x3] (!%p1133_p0)  ;;  %v849_v58 = vld [vmem:[#allocation2 + $0x8] sm:$0xff] (!%p1133_p0) }
 0x14c   : > { %v1269_v46 = vpack.c.bf16 (!%p1133_p0), %v749_v45, %v748_v24  ;;  %v1134_v56 = vld [vmem:[%s1849_s4] ss:$0 sm:$0xff] (!%p1133_p0)  ;;  %v850_v59 = vld [vmem:[#allocation2 + $0x10] sm:$0xff] (!%p1133_p0)  ;;  %v851_v62 = vld [vmem:[#allocation2 + $0x18] sm:$0xff] (!%p1133_p0)  ;;  %v866_v44 = vunpack.c.l.bf16 (!%p1133_p0), %v849_v58  ;;  %v867_v10 = vunpack.c.h.bf16 (!%p1133_p0), %v849_v58 }
 0x14d   : > { %1252 = vmatpush3.bf16.msra.mxu0 (!%p1133_p0), %v1251_v32  ;;  %v848_v57 = vld [vmem:[#allocation2] sm:$0xff] (!%p1133_p0)  ;;  %v853_v63 = vld [vmem:[#allocation2 + $0x28] sm:$0xff] (!%p1133_p0)  ;;  %v1743_v2 = vld [vmem:[#allocation2 + $0x30] sm:$0xff] (!%p1133_p0)  ;;  %v868_v11 = vunpack.c.l.bf16 (!%p1133_p0), %v850_v59  ;;  %v869_v13 = vunpack.c.h.bf16 (!%p1133_p0), %v850_v59  ;;  %v870_v12 = vunpack.c.l.bf16 (!%p1133_p0), %v851_v62  ;;  %v871_v16 = vunpack.c.h.bf16 (!%p1133_p0), %v851_v62 }
 0x14e   : > { %1253 = vmatprep.subr.bf16.mxu0 %v1451_v27  ;;  %v852_v55 = vld [vmem:[#allocation2 + $0x20] sm:$0xff]  ;;  %v864_v3 = vunpack.c.l.bf16 %v848_v57  ;;  %v865_v4 = vunpack.c.h.bf16 %v848_v57  ;;  %v855_v6 = vld [vmem:[#allocation2 + $0x38] sm:$0xff]  ;;  %v857_v15 = vld [vmem:[#allocation2 + $0x48] sm:$0xff]  ;;  %v874_v22 = vunpack.c.l.bf16 %v853_v63  ;;  %v875_v14 = vunpack.c.h.bf16 %v853_v63 }
 0x14f   : > { %v856_v9 = vld [vmem:[#allocation2 + $0x40] sm:$0xff]  ;;  %v872_v17 = vunpack.c.l.bf16 %v852_v55  ;;  %v873_v18 = vunpack.c.h.bf16 %v852_v55  ;;  %v858_v21 = vld [vmem:[#allocation2 + $0x50] sm:$0xff]  ;;  %v859_v8 = vld [vmem:[#allocation2 + $0x58] sm:$0xff]  ;;  %v876_v23 = vunpack.c.l.bf16 %v1743_v2  ;;  %v877_v28 = vunpack.c.h.bf16 %v1743_v2 }
 0x150   : > { %v838_v49 = vld [vmem:[%s1850_s5] sm:$0x1]  ;;  %v878_v29 = vunpack.c.l.bf16 %v855_v6  ;;  %v879_v30 = vunpack.c.h.bf16 %v855_v6  ;;  %v880_v32 = vunpack.c.l.bf16 %v856_v9  ;;  %v862_v34 = vld [vmem:[#allocation2 + $0x70] sm:$0xff]  ;;  %v881_v35 = vunpack.c.h.bf16 %v856_v9 }
 0x151   : > { %1255 = vmatpush3.bf16.msra.mxu0 %v1254_v0  ;;  %v860_v26 = vld [vmem:[#allocation2 + $0x60] sm:$0xff]  ;;  %v863_v0 = vld [vmem:[#allocation2 + $0x78] sm:$0xff]  ;;  %v882_v36 = vunpack.c.l.bf16 %v857_v15  ;;  %v884_v38 = vunpack.c.l.bf16 %v858_v21  ;;  %v885_v7 = vunpack.c.h.bf16 %v858_v21  ;;  %v887_v60 = vunpack.c.h.bf16 %v859_v8 }
 0x152   : > { %1256 = vmatprep.subr.bf16.mxu0 %v1451_v27  ;;  %v888_v40 = vunpack.c.l.bf16 %v860_v26  ;;  %v893_v24 = vunpack.c.h.bf16 %v862_v34  ;;  %v894_v45 = vunpack.c.l.bf16 %v863_v0 }
 0x155   : > { %1258 = vmatpush3.bf16.msra.mxu0 %v1257_v37  ;;  %v883_v37 = vunpack.c.h.bf16 %v857_v15 }
 0x156   : > { %1259 = vmatprep.subr.bf16.mxu0 %v1451_v27 }
 0x159   : > { %1261 = vmatpush3.bf16.msra.mxu0 %v1260_v39  ;;  %v886_v39 = vunpack.c.l.bf16 %v859_v8 }
 0x15a   : > { %1262 = vmatprep.subr.bf16.mxu0 %v1451_v27 }
 0x15d   : > { %1264 = vmatpush3.bf16.msra.mxu0 %v1263_v41  ;;  %v889_v41 = vunpack.c.h.bf16 %v860_v26 }
 0x15e   : > { %1265 = vmatprep.subr.bf16.mxu0 %v1451_v27 }
 0x161   : > { %1267 = vmatpush3.bf16.msra.mxu0 %v1266_v43  ;;  %v892_v43 = vunpack.c.l.bf16 %v862_v34 }
 0x162   : > { %1268 = vmatprep.subr.bf16.mxu0 %v1451_v27  ;;  %v861_v27 = vld [vmem:[#allocation2 + $0x68] sm:$0xff] }
 0x163   : > { %v890_v1 = vunpack.c.l.bf16 %v861_v27  ;;  %v891_v42 = vunpack.c.h.bf16 %v861_v27 }
 0x165   : > { %1270 = vmatpush3.bf16.msra.mxu0 %v1269_v46  ;;  %v895_v46 = vunpack.c.h.bf16 %v863_v0 }
 0x168   : > { %1245 = vmatmul.mubr.f32.vlgmr.msra.gmra.mrb[0].mxu0 %v733_v47 }
 0x23b   : > { %v816_v31 = vpop.f32.mrb[0].mxu0 }
 0x23c   : > { %v820_v50 = vmul.f32 0.00390625, %v816_v31  ;;  %v1246_v51 = vpop.f32.mrb[1].mxu0 }
 0x23e   : > { %v821_v20 = vmul.f32 %v820_v50, %v820_v50 }
 0x240   : > { %v823_v52 = vrot.slane %v821_v20, 7 }
 0x242   : > { %v825_v53 = vsub.f32 %v820_v50, %v823_v52 }
 0x244   : > { %v826_v54 = vmax.f32 %v825_v53, 0.0 }
 0x246   : > { %v827_v25 = vadd.f32 1e-05, %v826_v54 }
 0x248   : > { %1352 = vrsqrt.f32 %v827_v25 }
 0x252   : > { %v1353_v48 = vpop.eup %1352 }
 0x253   : > { %v836_v61 = vmul.f32 %v1353_v48, %v1134_v56 }
 0x255   : > { %837 = vst [vmem:[#allocation4 - $0x1] sm:$0x2] %v836_v61  ;;  %v840_v5 = vrot.slane %v836_v61, 1 }
 0x257   : > { %v842_v19 = vmul.f32 %v840_v5, %v820_v50 }
 0x259   : > { %v843_v33 = vsub.f32 %v838_v49, %v842_v19 }
 0x25b   : > { %844 = vst [vmem:[#allocation4 + $0x1] sm:$0x1] %v843_v33 }
 0x25c   : > { %v1135_v47 = vld [vmem:[#allocation4] ss:$0 sm:$0xff] }
 0x25d   : > { %v901_v31 = vmul.f32 %v1135_v47, %v864_v3  ;;  %v902_v50 = vmul.f32 %v1135_v47, %v865_v4  ;;  %v903_v51 = vmul.f32 %v1135_v47, %v866_v44  ;;  %v904_v20 = vmul.f32 %v1135_v47, %v867_v10 }
 0x25e   : > { %v905_v52 = vmul.f32 %v1135_v47, %v868_v11  ;;  %v906_v53 = vmul.f32 %v1135_v47, %v869_v13  ;;  %v907_v54 = vmul.f32 %v1135_v47, %v870_v12  ;;  %v908_v25 = vmul.f32 %v1135_v47, %v871_v16 }
 0x25f   : > { %v909_v56 = vmul.f32 %v1135_v47, %v872_v17  ;;  %v910_v57 = vmul.f32 %v1135_v47, %v873_v18  ;;  %v911_v58 = vmul.f32 %v1135_v47, %v874_v22  ;;  %v912_v48 = vmul.f32 %v1135_v47, %v875_v14 }
 0x260   : > { %v913_v59 = vmul.f32 %v1135_v47, %v876_v23  ;;  %v914_v61 = vmul.f32 %v1135_v47, %v877_v28  ;;  %v915_v62 = vmul.f32 %v1135_v47, %v878_v29  ;;  %v916_v55 = vmul.f32 %v1135_v47, %v879_v30 }
 0x261   : > { %v917_v63 = vmul.f32 %v1135_v47, %v880_v32  ;;  %v918_v2 = vmul.f32 %v1135_v47, %v881_v35  ;;  %v919_v5 = vmul.f32 %v1135_v47, %v882_v36  ;;  %v920_v6 = vmul.f32 %v1135_v47, %v883_v37 }
 0x262   : > { %v921_v3 = vmul.f32 %v1135_v47, %v884_v38  ;;  %v922_v4 = vmul.f32 %v1135_v47, %v885_v7  ;;  %v923_v44 = vmul.f32 %v1135_v47, %v886_v39  ;;  %v924_v9 = vmul.f32 %v1135_v47, %v887_v60  ;;  %v1136_v10 = vld [vmem:[#allocation4 + $0x1] ss:$0 sm:$0xff] }
 0x263   : > { %v925_v11 = vmul.f32 %v1135_v47, %v888_v40  ;;  %v926_v13 = vmul.f32 %v1135_v47, %v889_v41  ;;  %v927_v49 = vmul.f32 %v1135_v47, %v890_v1  ;;  %v928_v15 = vmul.f32 %v1135_v47, %v891_v42 }
 0x264   : > { %v929_v12 = vmul.f32 %v1135_v47, %v892_v43  ;;  %v930_v16 = vmul.f32 %v1135_v47, %v893_v24  ;;  %v931_v17 = vmul.f32 %v1135_v47, %v894_v45  ;;  %v932_v18 = vmul.f32 %v1135_v47, %v895_v46 }
 0x265   : > { %v938_v19 = vadd.f32 %v1136_v10, %v901_v31  ;;  %v939_v21 = vadd.f32 %v1136_v10, %v902_v50  ;;  %v940_v8 = vadd.f32 %v1136_v10, %v903_v51  ;;  %v941_v22 = vadd.f32 %v1136_v10, %v904_v20 }
 0x266   : > { %v942_v14 = vadd.f32 %v1136_v10, %v905_v52  ;;  %v943_v23 = vadd.f32 %v1136_v10, %v906_v53  ;;  %v944_v26 = vadd.f32 %v1136_v10, %v907_v54  ;;  %v945_v27 = vadd.f32 %v1136_v10, %v908_v25 }
 0x267   : > { %v946_v28 = vadd.f32 %v1136_v10, %v909_v56  ;;  %v947_v29 = vadd.f32 %v1136_v10, %v910_v57  ;;  %v948_v30 = vadd.f32 %v1136_v10, %v911_v58  ;;  %v949_v32 = vadd.f32 %v1136_v10, %v912_v48  ;;  %970 = vst [vmem:[%s1571_s20] sm:$0xff] %v938_v19 }
 0x268   : > { %971 = vst [vmem:[%s1571_s20 + $0x8] sm:$0xff] %v939_v21  ;;  %972 = vst [vmem:[%s1571_s20 + $0x10] sm:$0xff] %v940_v8  ;;  %v950_v33 = vadd.f32 %v1136_v10, %v913_v59  ;;  %v951_v34 = vadd.f32 %v1136_v10, %v914_v61  ;;  %v952_v0 = vadd.f32 %v1136_v10, %v915_v62 }
 0x269   : > { %973 = vst [vmem:[%s1571_s20 + $0x18] sm:$0xff] %v941_v22  ;;  %v953_v35 = vadd.f32 %v1136_v10, %v916_v55  ;;  %974 = vst [vmem:[%s1571_s20 + $0x20] sm:$0xff] %v942_v14  ;;  %v954_v36 = vadd.f32 %v1136_v10, %v917_v63  ;;  %v955_v37 = vadd.f32 %v1136_v10, %v918_v2 }
 0x26a   : > { %975 = vst [vmem:[%s1571_s20 + $0x28] sm:$0xff] %v943_v23  ;;  %976 = vst [vmem:[%s1571_s20 + $0x30] sm:$0xff] %v944_v26  ;;  %v956_v38 = vadd.f32 %v1136_v10, %v919_v5  ;;  %v957_v7 = vadd.f32 %v1136_v10, %v920_v6  ;;  %v958_v39 = vadd.f32 %v1136_v10, %v921_v3 }
 0x26b   : > { %977 = vst [vmem:[%s1571_s20 + $0x38] sm:$0xff] %v945_v27  ;;  %978 = vst [vmem:[%s1571_s20 + $0x40] sm:$0xff] %v946_v28  ;;  %v959_v60 = vadd.f32 %v1136_v10, %v922_v4  ;;  %v960_v40 = vadd.f32 %v1136_v10, %v923_v44  ;;  %v961_v41 = vadd.f32 %v1136_v10, %v924_v9 }
 0x26c   : > { %979 = vst [vmem:[%s1571_s20 + $0x48] sm:$0xff] %v947_v29  ;;  %980 = vst [vmem:[%s1571_s20 + $0x50] sm:$0xff] %v948_v30  ;;  %v962_v1 = vadd.f32 %v1136_v10, %v925_v11  ;;  %v963_v42 = vadd.f32 %v1136_v10, %v926_v13  ;;  %v964_v43 = vadd.f32 %v1136_v10, %v927_v49 }
 0x26d   : > { %981 = vst [vmem:[%s1571_s20 + $0x58] sm:$0xff] %v949_v32  ;;  %982 = vst [vmem:[%s1571_s20 + $0x60] sm:$0xff] %v950_v33  ;;  %v965_v24 = vadd.f32 %v1136_v10, %v928_v15  ;;  %v966_v45 = vadd.f32 %v1136_v10, %v929_v12  ;;  %v967_v46 = vadd.f32 %v1136_v10, %v930_v16 }
 0x26e   : > { %983 = vst [vmem:[%s1571_s20 + $0x68] sm:$0xff] %v951_v34  ;;  %984 = vst [vmem:[%s1571_s20 + $0x70] sm:$0xff] %v952_v0  ;;  %v968_v47 = vadd.f32 %v1136_v10, %v931_v17  ;;  %v969_v31 = vadd.f32 %v1136_v10, %v932_v18 }
 0x26f   : > { %985 = vst [vmem:[%s1571_s20 + $0x78] sm:$0xff] %v953_v35  ;;  %986 = vst [vmem:[%s1571_s20 + $0x80] sm:$0xff] %v954_v36 }
 0x270   : > { %987 = vst [vmem:[%s1571_s20 + $0x88] sm:$0xff] %v955_v37  ;;  %988 = vst [vmem:[%s1571_s20 + $0x90] sm:$0xff] %v956_v38 }
 0x271   : > { %989 = vst [vmem:[%s1571_s20 + $0x98] sm:$0xff] %v957_v7  ;;  %990 = vst [vmem:[%s1571_s20 + $0xa0] sm:$0xff] %v958_v39 }
 0x272   : > { %991 = vst [vmem:[%s1571_s20 + $0xa8] sm:$0xff] %v959_v60  ;;  %992 = vst [vmem:[%s1571_s20 + $0xb0] sm:$0xff] %v960_v40 }
 0x273   : > { %993 = vst [vmem:[%s1571_s20 + $0xb8] sm:$0xff] %v961_v41  ;;  %994 = vst [vmem:[%s1571_s20 + $0xc0] sm:$0xff] %v962_v1 }
 0x274   : > { %995 = vst [vmem:[%s1571_s20 + $0xc8] sm:$0xff] %v963_v42  ;;  %996 = vst [vmem:[%s1571_s20 + $0xd0] sm:$0xff] %v964_v43 }
 0x275   : > { %997 = vst [vmem:[%s1571_s20 + $0xd8] sm:$0xff] %v965_v24  ;;  %998 = vst [vmem:[%s1571_s20 + $0xe0] sm:$0xff] %v966_v45 }
 0x276   : > { %999 = vst [vmem:[%s1571_s20 + $0xe8] sm:$0xff] %v967_v46  ;;  %1000 = vst [vmem:[%s1571_s20 + $0xf0] sm:$0xff] %v968_v47 }
 0x277   : > { %1001 = vst [vmem:[%s1571_s20 + $0xf8] sm:$0xff] %v969_v31 }
 0x278 PF: > { %s1143_s15 = sshll.u32 %s1436_s24, 12  ;;  %s1019_s19 = sshll.u32 %s1571_s20, 4  ;;  %s1789_s19 = int_to_ptr.vmem [resolvable:$true] %s1019_s19 }
 0x279   : > { %s1786_s18 = scalar_lea.hbm %s1851_s6, %s1143_s15  ;;  %s1793_s2 = scalar_lea.sflag [#allocation6], %s286_s13 }
 0x27a   : > { %s1354_s28 = scalar_lea.vmem %s1789_s19, 4096  ;;  %s1454_s24 = smov [#allocation5]  }
 0x27b   : > { %p1355_p1 = scmp.ne.s32.totalorder %s1789_s19, %s1354_s28  ;;  %s1358_s29 = sshll.u32 %s1454_s24, 4  ;;  %s1359_s29 = int_to_ptr.vmem [resolvable:$false] %s1358_s29 }
 0x27c   : > { %s1360_s10 = scalar_lea.vmem %s1359_s29, 8192  ;;  %p1361_p5 = scmp.lt.s32.totalorder %s1789_s19, %s1359_s29 }
 0x27d   : > { %p1356_p2 = pnand %p1355_p1, %p1541_p3  ;;  %p1362_p6 = scmp.lt.s32.totalorder %s1360_s10, %s1354_s28 }
 0x27f   : > { %p1357_p4 = pneg %p1356_p2  ;;  %p1363_p7 = por %p1362_p6, %p1361_p5 }
 0x281   : > { %p1364_p8 = pnand %p1363_p7, %p1357_p4 }
 0x283   : > { %1367 = shalt.err (!%p1364_p8)
}
 0x284   : > { %s1368_s13 = scalar_lea.hbm %s1786_s18, 4096  ;;  %s1372_s14 = scalar_lea.hbm %s1851_s6, 8192 }
 0x285   : > { %p1369_p10 = scmp.ne.s32.totalorder %s1786_s18, %s1368_s13  ;;  %p1373_p13 = scmp.lt.u32.totalorder %s1786_s18, %s1851_s6 }
 0x286   : > { %p1374_p0 = scmp.lt.u32.totalorder %s1372_s14, %s1368_s13  ;;  %p1376_p2 = scmp.lt.u32.totalorder %s1368_s13, %s1786_s18 }
 0x287   : > { %p1370_p11 = pnand %p1369_p10, %p1541_p3 }
 0x288   : > { %p1375_p1 = por %p1374_p0, %p1373_p13 }
 0x289   : > { %p1371_p12 = pneg %p1370_p11 }
 0x28a   : > { %p1377_p4 = por %p1376_p2, %p1375_p1 }
 0x28c   : > { %p1378_p5 = pnand %p1377_p4, %p1371_p12 }
 0x28e   : > { %1381 = shalt.err (!%p1378_p5)
}
 0x28f   : > { %s1455_s17 = smov 128   ;;  %s1456_s28 = smov 8  }
 0x290   : > { %1275 = dma.vmem_to_hbm [thread:$0]  (%p1541_p3), %s1789_s19, 4096, %s1786_s18, %s1793_s2, %s1455_s17, %s1455_s17, %s1456_s28  }
 0x291 PF: > { %p1281_p6 = scmp.ge.s32.totalorder %s1448_s27, 2  ;;  %s1034_s24 = sand.u32 1, %s1420_s21  }
 0x292   : > { %s1035_s29 = scalar_lea.sflag [#allocation6], %s1034_s24 }
 0x293   : > { %p1278_p7 = pnand %p1281_p6, %p1551_p9 }
 0x295   : > { %1415 = dma.done.wait (!%p1278_p7), %s1035_s29, 4096  }
 0x296   : > { %1417 = vsyncadd (!%p1278_p7), %s1035_s29, 4294963200  ;;  %s19_s27 = sadd.s32 1, %s1448_s27   ;;  %s1854_s21 = smov %s1424_s22 }
 0x297   : > { %p16_p8 = scmp.ge.s32.totalorder %s19_s27, 6   ;;  %s1855_s22 = smov %s1428_s23 }
 0x298   : > { %s1856_s23 = smov %s1559_s12  ;;  %s1857_s2 = smov %s1440_s25 }
 0x299   : > { %s1858_s24 = smov %s1444_s26  ;;  %s1859_s25 = smov %s1862_s30 }
 0x29a   : > { %s1860_s26 = smov %s1866_s7  ;;  %18 = sbr.rel (!%p16_p8) target bundleno = 5 (0x5), region = 97 }
 0x2a1   :  { %1040 = vsyncpa [#allocation6], 1 }
 0x2a2   :  { %1042 = vsyncpa [#allocation6 + $0x1], 1 }

</bundles_post_ra>
